<compile_context>
chip_gen: v7x
topology: tpu7x:2x2x1
jax: 0.10.0
libtpu: 0.0.40
codegen_flags: <defaults>
</compile_context>

<pallas_src>
import functools
import math

import jax
import jax.numpy as jnp
from jax.experimental import pallas as pl
from jax.experimental.pallas import tpu as pltpu


def _round_up(x, m):
    return (x + m - 1) // m * m


def _label_smoothing_kernel(x_ref, tgt_ref, out_ref,
                            acc_all, acc_tgt, acc_pad, *,
                            padding_idx, confidence, smooth_val, const_c,
                            pad_tile, pad_local):
    # x_ref:   (TR, TV) log-probabilities (f32 or bf16)
    # tgt_ref: (TR, 1)  int32 target class indices
    # out_ref: (1, 8, 128) f32 per-row-tile partial (scalar at [0,0,0], rest 0)
    # acc_all: (TR, 1) f32  running sum_col x
    # acc_tgt: (TR, 1) f32  running x[row, tgt[row]]
    # acc_pad: (TR, 1) f32  x[row, padding_idx] (assigned once per row tile)
    j = pl.program_id(1)
    nj = pl.num_programs(1)

    x = x_ref[...].astype(jnp.float32)            # upcast right after load
    tgt = tgt_ref[...]                            # (TR, 1) int32
    tr, tv = x.shape

    # Loop-invariant local lane index; compare against the per-row adjusted
    # target instead of building global column indices.
    local = jax.lax.broadcasted_iota(jnp.int32, (tr, tv), 1)
    tgt_local = tgt - j * tv                      # (TR, 1)

    s_all = jnp.sum(x, axis=-1, keepdims=True)                       # XLU
    s_tgt = jnp.sum(jnp.where(local == tgt_local, x, 0.0),
                    axis=-1, keepdims=True)                          # cmp+sel+XLU

    @pl.when(j == 0)
    def _first():                                 # init folded into first step
        acc_all[...] = s_all
        acc_tgt[...] = s_tgt

    @pl.when(j > 0)
    def _accumulate():
        acc_all[...] += s_all
        acc_tgt[...] += s_tgt

    # The padding column lives in exactly one vocab tile; capture it there only.
    @pl.when(j == pad_tile)
    def _capture_pad():
        acc_pad[...] = x[:, pad_local:pad_local + 1]

    @pl.when(j == nj - 1)
    def _epilogue():
        # For non-padded rows:
        #   sum_col w*x = sv*S_all + (conf - sv)*x[tgt] - sv*x[pad]
        #   loss_row    = C - sum_col w*x
        s = (jnp.float32(smooth_val) * acc_all[...]
             + jnp.float32(confidence - smooth_val) * acc_tgt[...]
             - jnp.float32(smooth_val) * acc_pad[...])
        losses = jnp.where(tgt != padding_idx,
                           jnp.float32(const_c) - s, jnp.float32(0.0))
        part = jnp.sum(losses)
        # Lane-dense full-block store; the partial lives at [0, 0, 0].
        sub = jax.lax.broadcasted_iota(jnp.int32, (1, 8, 128), 1)
        lane = jax.lax.broadcasted_iota(jnp.int32, (1, 8, 128), 2)
        out_ref[...] = jnp.where((sub == 0) & (lane == 0), part,
                                 jnp.float32(0.0))


def label_smoothing_loss(x, target, *, size, padding_idx, smoothing=0.0,
                         row_tile=256, vocab_tile=4096,
                         vmem_limit_bytes=48 * 1024 * 1024):
    """Forward pass of LabelSmoothing: returns the scalar KLDiv(sum) loss."""
    n, v = x.shape
    assert v == size

    confidence = 1.0 - smoothing
    smooth_val = smoothing / (size - 2)
    # Constant-folded t*log(t) contribution of one non-padded row.
    const_c = 0.0
    if confidence > 0.0:
        const_c += confidence * math.log(confidence)
    if smooth_val > 0.0:
        const_c += (size - 2) * smooth_val * math.log(smooth_val)

    # Row-tile granule: 16 sublanes for bf16 (packed rows), 8 otherwise.
    gran = 16 if x.dtype == jnp.bfloat16 else 8
    n_gran = _round_up(n, gran)
    rt = _round_up(min(row_tile, n_gran), gran)
    # v7x megacore: if one row tile would cover everything but the problem can
    # be split, use two row tiles so both TensorCores get work.
    if n_gran > gran and n_gran <= rt:
        rt = _round_up((n_gran + 1) // 2, gran)
    vt = _round_up(min(vocab_tile, _round_up(v, 128)), 128)
    n_pad = _round_up(n, rt)
    v_pad = _round_up(v, vt)

    # Pad: extra columns get x=0 (sv*0 contributes nothing and never matches a
    # target); extra rows get target=padding_idx so the epilogue mask zeroes them.
    if (n_pad, v_pad) != (n, v):
        x = jnp.pad(x, ((0, n_pad - n), (0, v_pad - v)))
    tgt = target.astype(jnp.int32)
    if n_pad != n:
        tgt = jnp.pad(tgt, (0, n_pad - n), constant_values=padding_idx)
    tgt = tgt.reshape(n_pad, 1)

    n_row_tiles = n_pad // rt
    n_vocab_tiles = v_pad // vt

    kernel = functools.partial(
        _label_smoothing_kernel,
        padding_idx=int(padding_idx),
        confidence=float(confidence),
        smooth_val=float(smooth_val),
        const_c=float(const_c),
        pad_tile=int(padding_idx) // vt,
        pad_local=int(padding_idx) % vt)

    out = pl.pallas_call(
        kernel,
        out_shape=jax.ShapeDtypeStruct((n_row_tiles, 8, 128), jnp.float32),
        grid_spec=pltpu.PrefetchScalarGridSpec(
            num_scalar_prefetch=0,
            grid=(n_row_tiles, n_vocab_tiles),
            in_specs=[
                pl.BlockSpec((rt, vt), lambda i, j: (i, j)),
                pl.BlockSpec((rt, 1), lambda i, j: (i, 0)),
            ],
            out_specs=pl.BlockSpec((1, 8, 128), lambda i, j: (i, 0, 0)),
            scratch_shapes=[pltpu.VMEM((rt, 1), jnp.float32),
                            pltpu.VMEM((rt, 1), jnp.float32),
                            pltpu.VMEM((rt, 1), jnp.float32)],
        ),
        compiler_params=pltpu.CompilerParams(
            dimension_semantics=("parallel", "arbitrary"),
            vmem_limit_bytes=vmem_limit_bytes),
    )(x, tgt)

    # One partial per row tile -> final scalar sum in the wrapper.
    return jnp.sum(out[:, 0, 0])


def _reference_loss(x, target, *, size, padding_idx, smoothing):
    # Pure-JAX reference mirroring the PyTorch forward.
    confidence = 1.0 - smoothing
    n, v = x.shape
    x = x.astype(jnp.float32)
    true_dist = jnp.full((n, v), smoothing / (size - 2), dtype=jnp.float32)
    true_dist = true_dist.at[jnp.arange(n), target].set(confidence)
    true_dist = true_dist.at[:, padding_idx].set(0.0)
    true_dist = jnp.where((target == padding_idx)[:, None], 0.0, true_dist)
    kl = jnp.where(true_dist > 0,
                   true_dist * (jnp.log(jnp.maximum(true_dist, 1e-30)) - x),
                   0.0)
    return jnp.sum(kl)


if __name__ == "__main__":
    key = jax.random.PRNGKey(0)
    N, V = 48, 160                # small demo: 48 tokens, vocab 160
    smoothing = 0.1

    kx, kt = jax.random.split(key)
    logits = jax.random.normal(kx, (N, V), dtype=jnp.float32)
    x = jax.nn.log_softmax(logits, axis=-1)          # KLDivLoss expects log-probs
    target = jax.random.randint(kt, (N,), 0, V, dtype=jnp.int32)

    ok = True
    # Two padding indices: one in the first vocab tile and one in the second
    # (exercises both j == pad_tile and j != pad_tile paths).  Small tiles here
    # just to get multiple grid steps on both axes (3 row x 2 vocab tiles);
    # defaults are sized for real workloads.
    for padding_idx in (0, 150):
        tgt = target.at[3].set(padding_idx).at[11].set(padding_idx) \
                    .at[40].set(padding_idx)
        loss = label_smoothing_loss(x, tgt, size=V, padding_idx=padding_idx,
                                    smoothing=smoothing,
                                    row_tile=16, vocab_tile=128)
        loss = jax.block_until_ready(loss)
        ref = _reference_loss(x, tgt, size=V, padding_idx=padding_idx,
                              smoothing=smoothing)
        ok = ok and bool(jnp.allclose(loss, ref, rtol=1e-4, atol=1e-2))

    # bf16 log-probs (halves HBM bytes for this memory-bound kernel); the kernel
    # upcasts after load and accumulates in f32; rows use the 16-sublane granule.
    x_bf16 = x.astype(jnp.bfloat16)
    tgt = target.at[3].set(0).at[11].set(0)
    loss_bf = label_smoothing_loss(x_bf16, tgt, size=V, padding_idx=0,
                                   smoothing=smoothing)
    loss_bf = jax.block_until_ready(loss_bf)
    ref_bf = _reference_loss(x_bf16.astype(jnp.float32), tgt, size=V,
                             padding_idx=0, smoothing=smoothing)
    ok = ok and bool(jnp.allclose(loss_bf, ref_bf, rtol=1e-3, atol=1e-1))

    assert ok, "kernel does not match reference"
    print("KERNEL_OK")
</pallas_src>

<mosaic_0001>
module attributes {stable_mosaic.version = 11 : i64} {
  func.func @_label_smoothing_kernel(%arg0: i32, %arg1: i32, %arg2: memref<16x128xf32, #tpu.memory_space<vmem>>, %arg3: memref<16x1xi32, #tpu.memory_space<vmem>>, %arg4: memref<1x8x128xf32, #tpu.memory_space<vmem>>, %arg5: memref<16x1xf32, #tpu.memory_space<vmem>>, %arg6: memref<16x1xf32, #tpu.memory_space<vmem>>, %arg7: memref<16x1xf32, #tpu.memory_space<vmem>>) attributes {dimension_semantics = [#tpu.dimension_semantics<parallel>, #tpu.dimension_semantics<arbitrary>], iteration_bounds = array<i64: 3, 2>, scalar_prefetch = 0 : i64, scratch_operands = 3 : i64, tpu.core_type = #tpu.core_type<tc>, window_params = [{transform_indices = @transform_0, window_bounds = array<i64: 16, 128>}, {transform_indices = @transform_1, window_bounds = array<i64: 16, 1>}, {transform_indices = @transform_2, window_bounds = array<i64: 1, 8, 128>}]} {
    %c0 = arith.constant 0 : index
    %c0_0 = arith.constant 0 : index
    %0 = vector.load %arg2[%c0, %c0_0] : memref<16x128xf32, #tpu.memory_space<vmem>>, vector<16x128xf32>
    %c0_1 = arith.constant 0 : index
    %c0_2 = arith.constant 0 : index
    %1 = vector.load %arg3[%c0_1, %c0_2] : memref<16x1xi32, #tpu.memory_space<vmem>>, vector<16x1xi32>
    %2 = tpu.iota {dimensions = array<i32: 1>} : vector<16x128xi32>
    %c128_i32 = arith.constant 128 : i32
    %3 = arith.muli %arg1, %c128_i32 : i32
    %4 = vector.broadcast %3 : i32 to vector<16x1xi32>
    %5 = arith.subi %1, %4 : vector<16x1xi32>
    %cst = arith.constant dense<0.000000e+00> : vector<16xf32>
    %6 = vector.multi_reduction <add>, %0, %cst [1] : vector<16x128xf32> to vector<16xf32>
    %7 = vector.shape_cast %6 : vector<16xf32> to vector<16x1xf32>
    %8 = vector.broadcast %5 : vector<16x1xi32> to vector<16x128xi32>
    %9 = arith.cmpi eq, %2, %8 : vector<16x128xi32>
    %cst_3 = arith.constant 0.000000e+00 : f32
    %10 = vector.broadcast %cst_3 : f32 to vector<16x128xf32>
    %11 = arith.select %9, %0, %10 : vector<16x128xi1>, vector<16x128xf32>
    %cst_4 = arith.constant dense<0.000000e+00> : vector<16xf32>
    %12 = vector.multi_reduction <add>, %11, %cst_4 [1] : vector<16x128xf32> to vector<16xf32>
    %13 = vector.shape_cast %12 : vector<16xf32> to vector<16x1xf32>
    %c0_i32 = arith.constant 0 : i32
    %14 = arith.cmpi eq, %arg1, %c0_i32 : i32
    %15 = arith.extui %14 : i1 to i32
    %c0_i32_5 = arith.constant 0 : i32
    %16 = arith.cmpi ne, %15, %c0_i32_5 : i32
    scf.if %16 {
      %c0_11 = arith.constant 0 : index
      %c0_12 = arith.constant 0 : index
      %26 = vector.load %arg5[%c0_11, %c0_12] : memref<16x1xf32, #tpu.memory_space<vmem>>, vector<16x1xf32>
      tpu.vector_store %arg5[%c0_11, %c0_12], %7 {strides = array<i32>} : memref<16x1xf32, #tpu.memory_space<vmem>>, vector<16x1xf32>,
      %c0_13 = arith.constant 0 : index
      %c0_14 = arith.constant 0 : index
      %27 = vector.load %arg6[%c0_13, %c0_14] : memref<16x1xf32, #tpu.memory_space<vmem>>, vector<16x1xf32>
      tpu.vector_store %arg6[%c0_13, %c0_14], %13 {strides = array<i32>} : memref<16x1xf32, #tpu.memory_space<vmem>>, vector<16x1xf32>,
    } else {
    }
    %c0_i32_6 = arith.constant 0 : i32
    %17 = arith.cmpi sgt, %arg1, %c0_i32_6 : i32
    %18 = arith.extui %17 : i1 to i32
    %c0_i32_7 = arith.constant 0 : i32
    %19 = arith.cmpi ne, %18, %c0_i32_7 : i32
    scf.if %19 {
      %c0_11 = arith.constant 0 : index
      %c0_12 = arith.constant 0 : index
      %26 = vector.load %arg5[%c0_11, %c0_12] : memref<16x1xf32, #tpu.memory_space<vmem>>, vector<16x1xf32>
      %27 = arith.addf %26, %7 : vector<16x1xf32>
      %c0_13 = arith.constant 0 : index
      %c0_14 = arith.constant 0 : index
      %28 = vector.load %arg5[%c0_13, %c0_14] : memref<16x1xf32, #tpu.memory_space<vmem>>, vector<16x1xf32>
      tpu.vector_store %arg5[%c0_13, %c0_14], %27 {strides = array<i32>} : memref<16x1xf32, #tpu.memory_space<vmem>>, vector<16x1xf32>,
      %c0_15 = arith.constant 0 : index
      %c0_16 = arith.constant 0 : index
      %29 = vector.load %arg6[%c0_15, %c0_16] : memref<16x1xf32, #tpu.memory_space<vmem>>, vector<16x1xf32>
      %30 = arith.addf %29, %13 : vector<16x1xf32>
      %c0_17 = arith.constant 0 : index
      %c0_18 = arith.constant 0 : index
      %31 = vector.load %arg6[%c0_17, %c0_18] : memref<16x1xf32, #tpu.memory_space<vmem>>, vector<16x1xf32>
      tpu.vector_store %arg6[%c0_17, %c0_18], %30 {strides = array<i32>} : memref<16x1xf32, #tpu.memory_space<vmem>>, vector<16x1xf32>,
    } else {
    }
    %c0_i32_8 = arith.constant 0 : i32
    %20 = arith.cmpi eq, %arg1, %c0_i32_8 : i32
    %21 = arith.extui %20 : i1 to i32
    %c0_i32_9 = arith.constant 0 : i32
    %22 = arith.cmpi ne, %21, %c0_i32_9 : i32
    scf.if %22 {
      %26 = vector.extract_strided_slice %0 {offsets = [0, 0], sizes = [16, 1], strides = [1, 1]} : vector<16x128xf32> to vector<16x1xf32>
      %c0_11 = arith.constant 0 : index
      %c0_12 = arith.constant 0 : index
      %27 = vector.load %arg7[%c0_11, %c0_12] : memref<16x1xf32, #tpu.memory_space<vmem>>, vector<16x1xf32>
      tpu.vector_store %arg7[%c0_11, %c0_12], %26 {strides = array<i32>} : memref<16x1xf32, #tpu.memory_space<vmem>>, vector<16x1xf32>,
    } else {
    }
    %c1_i32 = arith.constant 1 : i32
    %23 = arith.cmpi eq, %arg1, %c1_i32 : i32
    %24 = arith.extui %23 : i1 to i32
    %c0_i32_10 = arith.constant 0 : i32
    %25 = arith.cmpi ne, %24, %c0_i32_10 : i32
    scf.if %25 {
      %c0_11 = arith.constant 0 : index
      %c0_12 = arith.constant 0 : index
      %26 = vector.load %arg5[%c0_11, %c0_12] : memref<16x1xf32, #tpu.memory_space<vmem>>, vector<16x1xf32>
      %cst_13 = arith.constant 6.32911397E-4 : f32
      %27 = vector.broadcast %cst_13 : f32 to vector<16x1xf32>
      %28 = arith.mulf %27, %26 : vector<16x1xf32>
      %c0_14 = arith.constant 0 : index
      %c0_15 = arith.constant 0 : index
      %29 = vector.load %arg6[%c0_14, %c0_15] : memref<16x1xf32, #tpu.memory_space<vmem>>, vector<16x1xf32>
      %cst_16 = arith.constant 0.899367094 : f32
      %30 = vector.broadcast %cst_16 : f32 to vector<16x1xf32>
      %31 = arith.mulf %30, %29 : vector<16x1xf32>
      %32 = arith.addf %28, %31 : vector<16x1xf32>
      %c0_17 = arith.constant 0 : index
      %c0_18 = arith.constant 0 : index
      %33 = vector.load %arg7[%c0_17, %c0_18] : memref<16x1xf32, #tpu.memory_space<vmem>>, vector<16x1xf32>
      %cst_19 = arith.constant 6.32911397E-4 : f32
      %34 = vector.broadcast %cst_19 : f32 to vector<16x1xf32>
      %35 = arith.mulf %34, %33 : vector<16x1xf32>
      %36 = arith.subf %32, %35 : vector<16x1xf32>
      %c0_i32_20 = arith.constant 0 : i32
      %37 = vector.broadcast %c0_i32_20 : i32 to vector<16x1xi32>
      %38 = arith.cmpi ne, %1, %37 : vector<16x1xi32>
      %cst_21 = arith.constant -0.831342459 : f32
      %39 = vector.broadcast %cst_21 : f32 to vector<16x1xf32>
      %40 = arith.subf %39, %36 : vector<16x1xf32>
      %cst_22 = arith.constant 0.000000e+00 : f32
      %41 = vector.broadcast %cst_22 : f32 to vector<16x1xf32>
      %42 = arith.select %38, %40, %41 : vector<16x1xi1>, vector<16x1xf32>
      %43 = vector.shape_cast %42 : vector<16x1xf32> to vector<1x16x1xf32>
      %cst_23 = arith.constant dense<0.000000e+00> : vector<1xf32>
      %44 = vector.multi_reduction <add>, %43, %cst_23 [1, 2] : vector<1x16x1xf32> to vector<1xf32>
      %45 = vector.shape_cast %44 : vector<1xf32> to vector<1x1x1xf32>
      %46 = vector.extract %45[0, 0, 0] : f32 from vector<1x1x1xf32>
      %47 = tpu.iota {dimensions = array<i32: 1>} : vector<1x8x128xi32>
      %48 = tpu.iota {dimensions = array<i32: 2>} : vector<1x8x128xi32>
      %c0_i32_24 = arith.constant 0 : i32
      %49 = vector.broadcast %c0_i32_24 : i32 to vector<1x8x128xi32>
      %50 = arith.cmpi eq, %47, %49 : vector<1x8x128xi32>
      %c0_i32_25 = arith.constant 0 : i32
      %51 = vector.broadcast %c0_i32_25 : i32 to vector<1x8x128xi32>
      %52 = arith.cmpi eq, %48, %51 : vector<1x8x128xi32>
      %53 = arith.andi %50, %52 : vector<1x8x128xi1>
      %cst_26 = arith.constant 0.000000e+00 : f32
      %54 = vector.broadcast %46 : f32 to vector<1x8x128xf32>
      %55 = vector.broadcast %cst_26 : f32 to vector<1x8x128xf32>
      %56 = arith.select %53, %54, %55 : vector<1x8x128xi1>, vector<1x8x128xf32>
      %c0_27 = arith.constant 0 : index
      %c0_28 = arith.constant 0 : index
      %c0_29 = arith.constant 0 : index
      %57 = vector.load %arg4[%c0_27, %c0_28, %c0_29] : memref<1x8x128xf32, #tpu.memory_space<vmem>>, vector<1x8x128xf32>
      tpu.vector_store %arg4[%c0_27, %c0_28, %c0_29], %56 {strides = array<i32>} : memref<1x8x128xf32, #tpu.memory_space<vmem>>, vector<1x8x128xf32>,
    } else {
    }
    return
  }
  func.func @transform_0(%arg0: i32, %arg1: i32) -> (i32, i32) {
    %c0_i32 = arith.constant 0 : i32
    return %arg0, %arg1 : i32, i32
  }
  func.func @transform_1(%arg0: i32, %arg1: i32) -> (i32, i32) {
    %c0_i32 = arith.constant 0 : i32
    %c0_i32_0 = arith.constant 0 : i32
    return %arg0, %c0_i32 : i32, i32
  }
  func.func @transform_2(%arg0: i32, %arg1: i32) -> (i32, i32, i32) {
    %c0_i32 = arith.constant 0 : i32
    %c0_i32_0 = arith.constant 0 : i32
    %c0_i32_1 = arith.constant 0 : i32
    return %arg0, %c0_i32, %c0_i32_0 : i32, i32, i32
  }
}

</mosaic_0001>

<bundles_post_ra>
// kernel: tpu_custom_call.1
= control target key start
LH: loop header
LB: loop body
LE: loop exit
PB: predicated region body
PF: predicated region fallthrough
CT: control target
= control target key end

     0   :  { %7 = vsyncpa [#allocation6], 0  ;;  %s973_s0 = inlined_call_operand.hbm [shape: f32[48,256], index: 0, kind: input, shape index: {}]   ;;  %s974_s1 = inlined_call_operand.vmem [shape: s32[48,1], index: 1, kind: input, shape index: {}]   ;;  %s975_s2 = inlined_call_operand.hbm [shape: f32[3,8,128], index: 2, kind: output, shape index: {}]  }
   0x1   :  { %9 = vsyncpa [#allocation6 + $0x1], 0 }
   0x2   :  { %10 = vsyncpa [#allocation7], 0 }
   0x3   :  { %12 = vsyncpa [#allocation7 + $0x1], 0  ;;  %s724_s9 = smov 0   ;;  %s726_s10 = smov 0  }
   0x4   :  { %s728_s11 = smov 0   ;;  %s730_s12 = smov 0  }
   0x5   :  { %s732_s13 = smov 0   ;;  %s734_s14 = smov 0  }
   0x6   :  { %s736_s15 = smov 0   ;;  %s738_s16 = smov 0  }
   0x7   :  { %s740_s17 = smov 0   ;;  %s742_s18 = smov 0  }
   0x8   :  { %s744_s19 = smov 0  }
   0x9 LB: > { %s417_s20 = sadd.s32 4294967295, %s701_s19   ;;  %s418_s21 = sadd.s32 4294967294, %s701_s19   ;;  %s701_s19 = sphi %s744_s19, %s18_s19   ;;  %s697_s18 = sphi %s742_s18, %s996_s18   ;;  %s693_s17 = sphi %s740_s17, %s995_s17   ;;  %s689_s16 = sphi %s738_s16, %s994_s16   ;;  %s685_s15 = sphi %s736_s15, %s993_s15   ;;  %s681_s14 = sphi %s734_s14, %s992_s14   ;;  %s677_s13 = sphi %s732_s13, %s991_s13   ;;  %s673_s12 = sphi %s730_s12, %s990_s12   ;;  %s669_s11 = sphi %s728_s11, %s989_s11   ;;  %s665_s10 = sphi %s726_s10, %s988_s10   ;;  %s661_s9 = sphi %s724_s9, %s987_s9  }
   0xa   : > { %s27_s22 = sadd.s32 1, %s693_s17  ;;  %s30_s23 = sadd.s32 1, %s697_s18 }
   0xb   : > { %p28_p0 = scmp.ge.s32.totalorder %s27_s22, 2  ;;  %s39_s24 = sadd.s32 1, %s681_s14 }
   0xc   : > { %p46_p1 = scmp.ne.s32.totalorder %s681_s14, %s677_s13  ;;  %p47_p2 = scmp.eq.s32.totalorder %s701_s19, 0 }
   0xd   : > { %s998_s22 = smov (%p28_p0, %s27_s22), 0  ;;  %s1000_s23 = smov (!%p28_p0, %s30_s23), %s697_s18 }
   0xe   : > { %s35_s25 = ssub.s32 %s693_s17, %s998_s22  ;;  %p790_p3 = por %p47_p2, %p46_p1 }
   0xf   : > { %p32_p4 = scmp.ge.s32.totalorder %s1000_s23, 3  ;;  %p52_p5 = scmp.ne.s32.totalorder %s677_s13, %s673_s12 }
  0x10   : > { %p53_p6 = scmp.eq.s32.totalorder %s417_s20, 0  ;;  %s91_s27 = sadd.s32 1, %s669_s11 }
  0x11   : > { %s1002_s23 = smov (%p32_p4, %s1000_s23), 0  ;;  %p101_p8 = scmp.ne.s32.totalorder %s669_s11, %s665_s10 }
  0x12   : > { %979 = sst [smem:[#allocation11_spill]] %s1002_s23  ;;  %p798_p7 = por %p53_p6, %p52_p5 }
  0x13   : > { %s34_s29 = ssub.s32 %s697_s18, %s1002_s23  ;;  %p102_p9 = scmp.eq.s32.totalorder %s417_s20, 5 }
  0x14   : > { %s36_s30 = sor.u32 %s35_s25, %s34_s29  ;;  %p89_p10 = scmp.eq.s32.totalorder %s34_s29, 0 }
  0x15   : > { %p37_p11 = scmp.eq.s32.totalorder %s36_s30, 0  ;;  %p806_p12 = por %p102_p9, %p101_p8 }
  0x16   : > { %s811_s4 = scalar_select %p89_p10, %s669_s11, %s91_s27  }
  0x17   : > { %s981_s3 = scalar_select %p806_p12, 1, 0 }
  0x18   : > { %s814_s5 = scalar_select %p37_p11, %s681_s14, %s39_s24  }
  0x19   : > { %p107_p13 = scmp.ne.s32.totalorder %s665_s10, %s661_s9  ;;  %p108_p0 = scmp.eq.s32.totalorder %s418_s21, 5 }
  0x1a   : > { %p454_p1 = scmp.lt.s32.totalorder %s701_s19, 6  ;;  %s128_s7 = sand.u32 1, %s681_s14  }
  0x1b   : > { %p819_p2 = por %p108_p0, %p107_p13  ;;  %s421_s8 = sshll.u32 %s128_s7, 4 }
  0x1c   : > { %s439_s12 = sshll.u32 %s697_s18, 2  ;;  %s132_s25 = scalar_lea.vmem [#allocation5], %s421_s8 }
  0x1d   : > { %s982_s6 = scalar_select %p819_p2, 1, 0 }
  0x1e   : > { %s138_s20 = sadd.s32 %s693_s17, %s439_s12  ;;  %s141_s29 = sshll.u32 %s132_s25, 4  ;;  %s826_s29 = int_to_ptr.vmem [resolvable:$true] %s141_s29 }
  0x1f   : > { %s424_s30 = sshll.u32 %s138_s20, 7  ;;  %p835_p4 = pnand %p454_p1, %p790_p3 }
  0x20   : > { %s831_s24 = scalar_lea.hbm %s973_s0, %s424_s30  ;;  %s839_s8 = scalar_lea.sflag [#allocation6], %s128_s7 }
  0x21   : > { %s549_s12 = scalar_lea.hbm %s831_s24, 256  ;;  %p551_p6 = pneg %p835_p4 }
  0x22   : > { %p550_p5 = scmp.ne.s32.totalorder %s831_s24, %s549_s12  ;;  %s554_s20 = scalar_lea.hbm %s973_s0, 1536 }
  0x23   : > { %p555_p3 = scmp.lt.u32.totalorder %s831_s24, %s973_s0  ;;  %p556_p10 = scmp.lt.u32.totalorder %s554_s20, %s549_s12 }
  0x24   : > { %p552_p8 = pnand %p551_p6, %p550_p5  ;;  %p558_p13 = scmp.lt.u32.totalorder %s549_s12, %s831_s24 }
  0x25   : > { %p557_p11 = por %p556_p10, %p555_p3 }
  0x26   : > { %p553_p9 = pneg %p552_p8 }
  0x27   : > { %p559_p0 = por %p558_p13, %p557_p11 }
  0x29   : > { %p560_p1 = pnand %p559_p0, %p553_p9 }
  0x2b   : > { %563 = shalt.err (!%p560_p1)
}
  0x2c   : > { %s564_s7 = scalar_lea.vmem %s826_s29, 256  ;;  %s703_s27 = smov [#allocation5]  }
  0x2d   : > { %p565_p5 = scmp.ne.s32.totalorder %s826_s29, %s564_s7  ;;  %s569_s23 = sshll.u32 %s703_s27, 4  ;;  %s570_s23 = int_to_ptr.vmem [resolvable:$false] %s569_s23 }
  0x2e   : > { %s571_s26 = scalar_lea.vmem %s570_s23, 512  ;;  %p572_p12 = scmp.lt.s32.totalorder %s826_s29, %s570_s23 }
  0x2f   : > { %p567_p8 = pnand %p565_p5, %p551_p6  ;;  %p573_p3 = scmp.lt.s32.totalorder %s571_s26, %s564_s7 }
  0x31   : > { %p568_p2 = pneg %p567_p8  ;;  %p574_p10 = por %p573_p3, %p572_p12 }
  0x33   : > { %p575_p11 = pnand %p574_p10, %p568_p2 }
  0x35   : > { %578 = shalt.err (!%p575_p11)
}
  0x36   : > { %s704_s12 = smov 256   ;;  %s705_s20 = smov 128  }
  0x37   : > { %s706_s25 = smov 8   ;;  %p425_p6 = scmp.ge.s32.totalorder %s701_s19, 1 }
  0x38   : > { %449 = dma.hbm_to_vmem [thread:$0]  (!%p835_p4), %s831_s24, 256, %s826_s29, %s839_s8, %s704_s12, %s705_s20, %s706_s25  }
  0x39   : > { %p158_p9 = scmp.lt.s32.totalorder %s701_s19, 7 }
  0x3b   : > { %p159_p13 = pnand %p425_p6, %p158_p9 }
  0x3c   : > { %s164_s30 = sand.u32 (!%p159_p13), 1, %s677_s13  }
  0x3d   : > { %162 = sbr.rel (%p159_p13) target bundleno = 619 (0x26b), region = 28  ;;  %s426_s7 = sshll.u32 (!%p159_p13), %s164_s30, 4 }
  0x3e   : > { %s165_s27 = scalar_lea.sflag (!%p159_p13), [#allocation6], %s164_s30  ;;  %s168_s23 = scalar_lea.vmem (!%p159_p13), [#allocation5], %s426_s7 }
  0x44   : > { %652 = dma.done.wait (%p798_p7), %s165_s27, 256  }
  0x45   : > { %654 = vsyncadd (%p798_p7), %s165_s27, 4294967040  ;;  %s428_s26 = sshll.u32 %s689_s16, 1  ;;  %v707_v0 = vmov 0   ;;  %s430_s29 = sshll.u32 %s685_s15, 7  ;;  %v201_v4 = vld [vmem:[%s168_s23] sm:$0xff]  ;;  %v202_v7 = vld [vmem:[%s168_s23 + $0x8] sm:$0xff]  ;;  %v205_v8 = vlaneseq }
  0x46   : > { %548 = vset.pattern.permute.xlu0 %v707_v0  ;;  %p196_p12 = scmp.lt.s32.totalorder %s428_s26, 5  ;;  %v208_v1 = vstv %s430_s29  ;;  %211 = vadd.xlane.f32.xlu1 %v201_v4  ;;  %s191_s28 = sand.u32 1, %s665_s10  }
  0x47   : > { %v886_v9 = vand.u32 127, %v205_v8  ;;  %s893_s20 = sshll.u32 %s191_s28, 3  ;;  %p431_p7 = scmp.ne.s32.totalorder %s685_s15, 0 }
  0x48   : > { %s1004_s26 = smov (!%p196_p12, %s428_s26), 5  ;;  %s193_s25 = scalar_lea.vmem [#allocation8], %s893_s20  ;;  %vm233_vm2 = vcmask (!%p431_p7), 7168  }
  0x49   : > { %s429_s24 = sshll.u32 %s1004_s26, 3 }
  0x4a   : > { %s199_s12 = scalar_lea.vmem %s974_s1, %s429_s24  ;;  %213 = vadd.xlane.f32.xlu1 %v202_v7 }
  0x4b   : > { %v879_v2 = vld [vmem:[%s199_s12] sm:$0xff]  ;;  %v881_v3 = vld [vmem:[%s199_s12 + $0x8] sm:$0xff] }
  0x4c   : > { %v209_v5 = vsub.s32 %v879_v2, %v208_v1  ;;  %v210_v6 = vsub.s32 %v881_v3, %v208_v1 }
  0x4e   : > { %216 = vperm.xlu0 %548, %v209_v5  }
  0x52   : > { %219 = vperm.xlu0 %548, %v210_v6  }
  0xcd   : > { %v217_v10 = vpop.permute.xlu0 %216 }
  0xce   : > { %vm221_vm0 = vcmp.eq.s32.totalorder %v886_v9, %v217_v10 }
  0xcf   : > { %v223_v11 = vsel %vm221_vm0, %v201_v4, 0.0 }
  0xd0   : > { %225 = vadd.xlane.f32.xlu0 %v223_v11 }
  0xd1   : > { %v220_v12 = vpop.permute.xlu0 %219 }
  0xd2   : > { %vm222_vm1 = vcmp.eq.s32.totalorder %v886_v9, %v220_v12 }
  0xd3   : > { %v224_v13 = vsel %vm222_vm1, %v202_v7, 0.0  ;;  %v212_v14 = vpop.xlane.xlu1 %211 }
  0xd4   : > { %227 = vadd.xlane.f32.xlu1 %v224_v13  ;;  %234 = vst.msk [vmem:[#allocation2] sm:$0xff] (!%p431_p7), %vm233_vm2, %v212_v14 }
  0xd7   : > { %v214_v15 = vpop.xlane.xlu1 %213 }
  0xd8   : > { %235 = vst.msk [vmem:[#allocation2 + $0x8] sm:$0xff] (!%p431_p7), %vm233_vm2, %v214_v15 }
 0x15b   : > { %232 = sbr.rel (%p431_p7) target bundleno = 355 (0x163), region = 36 }
 0x15d   : > { %v226_v16 = vpop.xlane.xlu0 %225 }
 0x15e   : > { %236 = vst.msk [vmem:[#allocation3] sm:$0xff] (!%p431_p7), %vm233_vm2, %v226_v16 }
 0x161   : > { %v228_v17 = vpop.xlane.xlu1 %227 }
 0x162   : > { %237 = vst.msk [vmem:[#allocation3 + $0x8] sm:$0xff] %vm233_vm2, %v228_v17 }
 0x163 PF: > { %p432_p2 = scmp.le.s32.totalorder %s685_s15, 0 }
 0x164   : > { %v242_v18 = vld [vmem:[#allocation2] sm:$0xff] (!%p432_p2)  ;;  %vm246_vm3 = vcmask (!%p432_p2), 7168   ;;  %v243_v19 = vld [vmem:[#allocation2 + $0x8] sm:$0xff] (!%p432_p2) }
 0x165   : > { %241 = sbr.rel (%p432_p2) target bundleno = 365 (0x16d), region = 40  ;;  %v244_v21 = vadd.f32 (!%p432_p2), %v242_v18, %v212_v14  ;;  %v245_v22 = vadd.f32 (!%p432_p2), %v243_v19, %v214_v15 }
 0x166   : > { %v249_v20 = vld [vmem:[#allocation3] sm:$0xff] (!%p432_p2) }
 0x167   : > { %v251_v23 = vadd.f32 (!%p432_p2), %v249_v20, %v226_v16  ;;  %247 = vst.msk [vmem:[#allocation2] sm:$0xff] (!%p432_p2), %vm246_vm3, %v244_v21  ;;  %248 = vst.msk [vmem:[#allocation2 + $0x8] sm:$0xff] (!%p432_p2), %vm246_vm3, %v245_v22 }
 0x169   : > { %v250_v24 = vld [vmem:[#allocation3 + $0x8] sm:$0xff] (!%p432_p2)  ;;  %253 = vst.msk [vmem:[#allocation3] sm:$0xff] (!%p432_p2), %vm246_vm3, %v251_v23 }
 0x16a   : > { %v252_v25 = vadd.f32 (!%p432_p2), %v250_v24, %v228_v17 }
 0x16c   : > { %254 = vst.msk [vmem:[#allocation3 + $0x8] sm:$0xff] %vm246_vm3, %v252_v25 }
 0x16d PF: > { %257 = sbr.rel (%p431_p7) target bundleno = 372 (0x174), region = 44  ;;  %vm258_vm4 = vcmask (!%p431_p7), 7168  }
 0x16e   : > { %259 = vst.msk [vmem:[#allocation4] sm:$0xff] (!%p431_p7), %vm258_vm4, %v201_v4  ;;  %260 = vst.msk [vmem:[#allocation4 + $0x8] sm:$0xff] (!%p431_p7), %vm258_vm4, %v202_v7 }
 0x174 PF: > { %p434_p4 = scmp.ne.s32.totalorder %s685_s15, 1 }
 0x175   : > { %v265_v26 = vld [vmem:[#allocation2] sm:$0xff] (!%p434_p4)  ;;  %v266_v27 = vld [vmem:[#allocation2 + $0x8] sm:$0xff] (!%p434_p4)  ;;  %v269_v28 = vld [vmem:[#allocation3] sm:$0xff] (!%p434_p4)  ;;  %vm281_vm5 = vcmp.ne.s32.totalorder (!%p434_p4), %v879_v2, 0  ;;  %vm282_vm6 = vcmp.ne.s32.totalorder (!%p434_p4), %v881_v3, 0  ;;  %vm287_vm7 = vcmask (!%p434_p4), 7168  }
 0x176   : > { %264 = sbr.rel (%p434_p4) target bundleno = 594 (0x252), region = 48  ;;  %v267_v29 = vmul.f32 (!%p434_p4), 0.0006329114, %v265_v26  ;;  %v268_v30 = vmul.f32 (!%p434_p4), 0.0006329114, %v266_v27  ;;  %v270_v31 = vld [vmem:[#allocation3 + $0x8] sm:$0xff] (!%p434_p4) }
 0x177   : > { %v275_v32 = vld [vmem:[#allocation4] sm:$0xff] (!%p434_p4)  ;;  %v271_v33 = vmul.f32 (!%p434_p4), 0.8993671, %v269_v28  ;;  %v272_v34 = vmul.f32 (!%p434_p4), 0.8993671, %v270_v31  ;;  %v276_v35 = vld [vmem:[#allocation4 + $0x8] sm:$0xff] (!%p434_p4) }
 0x178   : > { %v277_v36 = vmul.f32 (!%p434_p4), 0.0006329114, %v275_v32  ;;  %v278_v37 = vmul.f32 (!%p434_p4), 0.0006329114, %v276_v35  ;;  %v301_v56 = vshrl.u32 (!%p434_p4), %v205_v8, 7  ;;  %vm303_vm9 = vcmp.eq.s32.totalorder (!%p434_p4), %v886_v9, 0 }
 0x179   : > { %v273_v38 = vadd.f32 (!%p434_p4), %v271_v33, %v267_v29  ;;  %v274_v39 = vadd.f32 (!%p434_p4), %v272_v34, %v268_v30 }
 0x17a   : > { %vm302_vm8 = vcmp.eq.s32.totalorder (!%p434_p4), %v301_v56, 0 }
 0x17b   : > { %v279_v40 = vsub.f32 (!%p434_p4), %v273_v38, %v277_v36  ;;  %v280_v41 = vsub.f32 (!%p434_p4), %v274_v39, %v278_v37  ;;  %vm304_vm10 = vmand (!%p434_p4), %vm302_vm8, %vm303_vm9 }
 0x17d   : > { %v283_v42 = vsub.f32 -0.83134246, %v279_v40  ;;  %v284_v43 = vsub.f32 -0.83134246, %v280_v41 }
 0x17f   : > { %v285_v44 = vsel %vm281_vm5, %v283_v42, 0.0  ;;  %v286_v45 = vsel %vm282_vm6, %v284_v43, 0.0 }
 0x180   : > { %v288_v46 = vsel %vm287_vm7, %v285_v44, 0.0  ;;  %v289_v47 = vsel %vm287_vm7, %v286_v45, 0.0 }
 0x181   : > { %v290_v48 = vadd.f32 %v289_v47, %v288_v46 }
 0x183   : > { %291 = vadd.xlane.f32.xlu0 %v290_v48 }
 0x210   : > { %v292_v49 = vpop.xlane.xlu0 %291 }
 0x211   : > { %v293_v50 = vrot.slane %v292_v49, 4 }
 0x213   : > { %v294_v51 = vadd.f32 %v293_v50, %v292_v49 }
 0x215   : > { %v295_v52 = vrot.slane %v294_v51, 2 }
 0x217   : > { %v296_v53 = vadd.f32 %v295_v52, %v294_v51 }
 0x219   : > { %v297_v54 = vrot.slane %v296_v53, 1 }
 0x21b   : > { %v298_v55 = vadd.f32 %v297_v54, %v296_v53 }
 0x21d   : > { %440 = vpush %v298_v55 }
 0x24e   : > { %s441_s15 = spop %440 }
 0x24f   : > { %v305_v57 = vstv %s441_s15 }
 0x250   : > { %v306_v58 = vsel %vm304_vm10, %v305_v57, 0.0 }
 0x251   : > { %307 = vst [vmem:[%s193_s25] sm:$0xff] %v306_v58 }
 0x252 PF: > { %s436_s30 = sshll.u32 %s689_s16, 7  ;;  %s322_s26 = sshll.u32 %s193_s25, 4  ;;  %s323_s26 = int_to_ptr.vmem [resolvable:$true] %s322_s26 }
 0x253   : > { %s913_s23 = scalar_lea.hbm %s975_s2, %s436_s30  ;;  %s309_s29 = scalar_lea.sflag [#allocation7], %s191_s28 }
 0x254   : > { %s579_s24 = scalar_lea.vmem %s323_s26, 128  ;;  %p984_p1 = scmp.ne.s32.totalorder %s981_s3, 0 }
 0x255   : > { %p580_p0 = scmp.ne.s32.totalorder %s323_s26, %s579_s24  ;;  %s708_s21 = smov [#allocation8]  }
 0x256   : > { %s583_s8 = sshll.u32 %s708_s21, 4  ;;  %s584_s8 = int_to_ptr.vmem [resolvable:$false] %s583_s8 }
 0x257   : > { %p581_p5 = pnand %p580_p0, %p984_p1  ;;  %s585_s12 = scalar_lea.vmem %s584_s8, 256 }
 0x258   : > { %p586_p3 = scmp.lt.s32.totalorder %s323_s26, %s584_s8  ;;  %p587_p10 = scmp.lt.s32.totalorder %s585_s12, %s579_s24 }
 0x259   : > { %p582_p8 = pneg %p581_p5 }
 0x25a   : > { %p588_p11 = por %p587_p10, %p586_p3 }
 0x25c   : > { %p589_p6 = pnand %p588_p11, %p582_p8 }
 0x25e   : > { %592 = shalt.err (!%p589_p6)
}
 0x25f   : > { %s593_s16 = scalar_lea.hbm %s913_s23, 128  ;;  %s597_s25 = scalar_lea.hbm %s975_s2, 384 }
 0x260   : > { %p594_p9 = scmp.ne.s32.totalorder %s913_s23, %s593_s16  ;;  %p598_p7 = scmp.lt.u32.totalorder %s913_s23, %s975_s2 }
 0x261   : > { %p599_p2 = scmp.lt.u32.totalorder %s597_s25, %s593_s16  ;;  %p601_p0 = scmp.lt.u32.totalorder %s593_s16, %s913_s23 }
 0x262   : > { %p595_p13 = pnand %p594_p9, %p984_p1 }
 0x263   : > { %p600_p4 = por %p599_p2, %p598_p7 }
 0x264   : > { %p596_p12 = pneg %p595_p13 }
 0x265   : > { %p602_p5 = por %p601_p0, %p600_p4 }
 0x267   : > { %p603_p8 = pnand %p602_p5, %p596_p12 }
 0x269   : > { %606 = shalt.err (!%p603_p8)
}
 0x26a   : > { %444 = dma.vmem_to_hbm [thread:$0]  (%p984_p1), %s323_s26, 128, %s913_s23, %s309_s29  }
 0x26b PF: > { %p455_p3 = scmp.ge.s32.totalorder %s701_s19, 2  ;;  %s334_s7 = sand.u32 1, %s661_s9  }
 0x26c   : > { %p985_p10 = scmp.ne.s32.totalorder %s982_s6, 0  ;;  %s335_s27 = scalar_lea.sflag [#allocation7], %s334_s7 }
 0x26e   : > { %p451_p11 = pnand %p455_p3, %p985_p10 }
 0x270   : > { %656 = dma.done.wait (!%p451_p11), %s335_s27, 128  }
 0x271   : > { %658 = vsyncadd (!%p451_p11), %s335_s27, 4294967168  ;;  %s18_s19 = sadd.s32 1, %s701_s19   ;;  %s986_s3 = sld [smem:[#allocation11_spill]] }
 0x272   : > { %p15_p6 = scmp.ge.s32.totalorder %s18_s19, 8   ;;  %s987_s9 = smov %s665_s10 }
 0x273   : > { %s988_s10 = smov %s669_s11  ;;  %s989_s11 = smov %s811_s4 }
 0x274   : > { %s990_s12 = smov %s677_s13  ;;  %s991_s13 = smov %s681_s14 }
 0x275   : > { %s992_s14 = smov %s814_s5  ;;  %s993_s15 = smov %s693_s17 }
 0x276   : > { %s994_s16 = smov %s697_s18  ;;  %s995_s17 = smov %s998_s22 }
 0x277   : > { %s996_s18 = smov %s986_s3  ;;  %17 = sbr.rel (!%p15_p6) target bundleno = 9 (0x9), region = 92 }
 0x27e   :  { %340 = vsyncpa [#allocation6], 1 }
 0x27f   :  { %342 = vsyncpa [#allocation6 + $0x1], 1 }
 0x280   :  { %343 = vsyncpa [#allocation7], 1 }
 0x281   :  { %345 = vsyncpa [#allocation7 + $0x1], 1 }

</bundles_post_ra>
